<compile_context>
chip_gen: v6e
topology: v6e:2x2x1
jax: 0.10.0
libtpu: 0.0.40
codegen_flags: <defaults>
</compile_context>

<pallas_src>
import functools

import jax
import jax.numpy as jnp
from jax.experimental import pallas as pl
from jax.experimental.pallas import tpu as pltpu


def _round_up(n, m):
    return ((n + m - 1) // m) * m


def _vmem_budgets():
    """Returns (budget for live (Tp, R_pad) f32 temporaries, scoped-VMEM limit)."""
    phys = 64 * 1024 * 1024
    try:
        info = pltpu.get_tpu_info()
        phys = int(getattr(info, "vmem_capacity_bytes", phys) or phys)
    except Exception:
        pass
    if phys >= 128 * 1024 * 1024:                      # v5e / v6e: 128 MiB physical VMEM
        return 40 * 1024 * 1024, 64 * 1024 * 1024
    return 20 * 1024 * 1024, 32 * 1024 * 1024          # v7x: 64 MiB physical VMEM


def _grid_gaussians_force_kernel(x_ref, ax_ref, h_ref, f_ref, *, bf16_exp=False):
    # x_ref : (Tp, 2)          point tile
    # ax_ref: (8, R_pad)       rows: m0, m1, -0.5/var0, -0.5/var1, 0, 0, 0, 0
    # h_ref : (R_pad, R_pad)   zero-padded per-Gaussian height matrix H[r0, r1]
    # f_ref : (Tp, 2)          output force tile
    x = x_ref[...]
    x0 = x[:, 0:1]
    x1 = x[:, 1:2]

    dm0 = x0 - ax_ref[0:1, :]            # (Tp, R_pad)  x0 - m0[r0]
    dm1 = x1 - ax_ref[1:2, :]            # (Tp, R_pad)  x1 - m1[r1]
    t0 = dm0 * ax_ref[2:3, :]            # -0.5 * dm0 / var0   (0 on padded lanes: iv = 0)
    t1 = dm1 * ax_ref[3:4, :]            # -0.5 * dm1 / var1

    a0 = dm0 * t0                        # exponent arguments (<= 0; exactly 0 on pad lanes)
    a1 = dm1 * t1
    if bf16_exp:                         # optional v6e/v7x fast path (lower accuracy)
        e0 = jnp.exp(a0.astype(jnp.bfloat16)).astype(jnp.float32)
        e1 = jnp.exp(a1.astype(jnp.bfloat16)).astype(jnp.float32)
    else:
        e0 = jnp.exp(a0)                 # (Tp, R_pad)   EUP
        e1 = jnp.exp(a1)

    w0 = e0 * (-2.0 * t0)                # e0 * dm0 / var0   (zero on padded lanes)
    w1 = e1 * (-2.0 * t1)                # e1 * dm1 / var1

    h = h_ref[...]
    # Fold the general per-Gaussian heights on the MXU:
    #   c0[p, r1] = sum_r0 w0[p, r0] * H[r0, r1];   c1[p, r1] = sum_r0 e0[p, r0] * H[r0, r1]
    c0 = jnp.dot(w0, h, preferred_element_type=jnp.float32,
                 precision=jax.lax.Precision.HIGHEST)
    c1 = jnp.dot(e0, h, preferred_element_type=jnp.float32,
                 precision=jax.lax.Precision.HIGHEST)

    f0 = jnp.sum(c0 * e1, axis=-1, keepdims=True)     # (Tp, 1)
    f1 = jnp.sum(c1 * w1, axis=-1, keepdims=True)     # (Tp, 1)
    f_ref[...] = jnp.concatenate([f0, f1], axis=-1)   # (Tp, 2)


def grid_gaussians_force(x, means_axis, heights, inv_vars_axis, *,
                         point_tile=2048, use_bf16_exp=False):
    """Force of a product-grid Gaussian bias.

    x            : (B, N, 2) f32 points.
    means_axis   : (2, R)   per-axis grid nodes; Gaussian (r0, r1) has mean
                            (means_axis[0, r0], means_axis[1, r1]).
    heights      : (1, R*R) per-Gaussian heights, g = r0 * R + r1 (module ordering).
    inv_vars_axis: (2, R)   per-axis inverse variances (the module uses a scalar var).
    returns      : (B, N, 2) f32 forces.
    """
    B, N, n_in = x.shape
    assert n_in == 2
    P = B * N
    R = means_axis.shape[1]
    G = heights.shape[1]
    assert G == R * R, "heights must hold one value per grid Gaussian (R*R)"

    # ---- lane-pad the per-axis tables to a multiple of 128 -------------------------------
    R_pad = _round_up(R, 128)
    pad_r = R_pad - R
    m = jnp.pad(means_axis.astype(jnp.float32), ((0, 0), (0, pad_r)))
    iv = jnp.pad(inv_vars_axis.astype(jnp.float32), ((0, 0), (0, pad_r)))   # padded iv = 0
    ax_params = jnp.concatenate(
        [m, -0.5 * iv, jnp.zeros((4, R_pad), jnp.float32)], axis=0)         # (8, R_pad)

    h_mat = jnp.pad(heights.astype(jnp.float32).reshape(R, R),
                    ((0, pad_r), (0, pad_r)))                               # (R_pad, R_pad)

    # ---- choose the point tile (generation-aware VMEM budget) ----------------------------
    temp_budget, vmem_limit = _vmem_budgets()
    point_tile = max(8, (int(point_tile) // 8) * 8)
    bytes_per_row = 12 * 4 * R_pad                       # ~12 live (Tp, R_pad) f32 temps
    vmem_cap = max(8, (temp_budget // bytes_per_row) // 8 * 8)
    point_tile = min(point_tile, vmem_cap, _round_up(P, 8))

    # keep the step count even when >1 so v7x's two TensorCores stay balanced
    steps = -(-P // point_tile)
    if steps > 1 and steps % 2 == 1:
        steps += 1
        point_tile = max(8, _round_up(-(-P // steps), 8))

    P_pad = _round_up(P, point_tile)
    x_flat = jnp.pad(x.reshape(P, 2).astype(jnp.float32), ((0, P_pad - P), (0, 0)))

    kernel = functools.partial(_grid_gaussians_force_kernel, bf16_exp=use_bf16_exp)

    out = pl.pallas_call(
        kernel,
        out_shape=jax.ShapeDtypeStruct((P_pad, 2), jnp.float32),
        grid_spec=pltpu.PrefetchScalarGridSpec(
            num_scalar_prefetch=0,
            grid=(P_pad // point_tile,),
            in_specs=[
                pl.BlockSpec((point_tile, 2), lambda i: (i, 0)),   # x tile
                pl.BlockSpec((8, R_pad), lambda i: (0, 0)),        # per-axis params (resident)
                pl.BlockSpec((R_pad, R_pad), lambda i: (0, 0)),    # height matrix (resident)
            ],
            out_specs=pl.BlockSpec((point_tile, 2), lambda i: (i, 0)),
        ),
        compiler_params=pltpu.CompilerParams(
            dimension_semantics=("parallel",),
            vmem_limit_bytes=vmem_limit,
        ),
    )(x_flat, ax_params, h_mat)

    return out[:P].reshape(B, N, 2)


def make_grid_gaussian_params(H, n_in, Lx, Hx, resolution, var=1.0):
    """Deterministic parameter construction mirroring GridGaussians.__init__."""
    assert n_in == 2
    msh_Lx = Lx + (Hx - Lx) / resolution
    lin = jnp.linspace(msh_Lx, Hx, resolution, dtype=jnp.float32)
    means_axis = jnp.stack([lin, lin], axis=0)                              # (2, R)
    heights = H * jnp.ones((1, resolution * resolution), jnp.float32)       # (1, G)
    inv_vars_axis = (1.0 / var) * jnp.ones((2, resolution), jnp.float32)    # (2, R)
    return means_axis, heights, inv_vars_axis


def reference_force(x, means_axis, heights, inv_vars_axis):
    """Plain-JAX dense reference of the analytic gradient (matches torch autograd force)."""
    B, N, _ = x.shape
    g0, g1 = jnp.meshgrid(means_axis[0], means_axis[1], indexing="ij")
    means = jnp.stack([g0.reshape(-1), g1.reshape(-1)], axis=-1)            # (G, 2)
    v0, v1 = jnp.meshgrid(inv_vars_axis[0], inv_vars_axis[1], indexing="ij")
    ivs = jnp.stack([v0.reshape(-1), v1.reshape(-1)], axis=-1)              # (G, 2)
    xf = x.reshape(-1, 1, 2)                                                # (P, 1, 2)
    d = xf - means[None]                                                    # (P, G, 2)
    e = jnp.exp(-0.5 * jnp.sum(d * d * ivs[None], axis=-1))                 # (P, G)
    w = heights[0][None, :] * e                                             # (P, G)
    f = jnp.sum(w[..., None] * d * ivs[None], axis=1)                       # (P, 2)
    return f.reshape(B, N, 2)


if __name__ == "__main__":
    Lx, Hx = -2.0, 2.0
    key = jax.random.PRNGKey(0)

    # config 1: R=16 (G=256), constant heights (module init), P=16.
    # config 2: R=10 (G=100) exercises the R-lane padding, non-constant heights exercise
    #           the MXU height fold, and P=21 exercises the point-axis padding.
    configs = [
        (16, 2, 8, 0.5, False),
        (10, 3, 7, 1.0, True),
    ]
    for resolution, B, N, var, perturb_heights in configs:
        means_axis, heights, inv_vars_axis = make_grid_gaussian_params(
            1.0, 2, Lx, Hx, resolution, var=var)
        if perturb_heights:
            key, sub = jax.random.split(key)
            heights = heights * (1.0 + 0.25 * jax.random.normal(
                sub, heights.shape, dtype=jnp.float32))
        key, sub = jax.random.split(key)
        x = jax.random.uniform(sub, (B, N, 2), dtype=jnp.float32, minval=Lx, maxval=Hx)

        force = grid_gaussians_force(x, means_axis, heights, inv_vars_axis)
        force = jax.block_until_ready(force)

        ref = reference_force(x, means_axis, heights, inv_vars_axis)
        assert force.shape == (B, N, 2)
        assert jnp.allclose(force, ref, atol=1e-4, rtol=1e-4), \
            f"mismatch vs analytic reference (resolution={resolution})"

    print("KERNEL_OK")
</pallas_src>

<mosaic_0001>
module attributes {stable_mosaic.version = 11 : i64} {
  func.func @_grid_gaussians_force_kernel(%arg0: i32, %arg1: memref<16x2xf32, #tpu.memory_space<vmem>>, %arg2: memref<8x128xf32, #tpu.memory_space<vmem>>, %arg3: memref<128x128xf32, #tpu.memory_space<vmem>>, %arg4: memref<16x2xf32, #tpu.memory_space<vmem>>) attributes {dimension_semantics = [#tpu.dimension_semantics<parallel>], iteration_bounds = array<i64: 1>, scalar_prefetch = 0 : i64, scratch_operands = 0 : i64, tpu.core_type = #tpu.core_type<tc>, window_params = [{transform_indices = @transform_0, window_bounds = array<i64: 16, 2>}, {pipeline_mode = #tpu.pipeline_mode<synchronous>, transform_indices = @transform_1, window_bounds = array<i64: 8, 128>}, {pipeline_mode = #tpu.pipeline_mode<synchronous>, transform_indices = @transform_2, window_bounds = array<i64: 128, 128>}, {transform_indices = @transform_3, window_bounds = array<i64: 16, 2>}]} {
    %c0 = arith.constant 0 : index
    %c0_0 = arith.constant 0 : index
    %0 = vector.load %arg1[%c0, %c0_0] : memref<16x2xf32, #tpu.memory_space<vmem>>, vector<16x2xf32>
    %1 = vector.extract_strided_slice %0 {offsets = [0, 0], sizes = [16, 1], strides = [1, 1]} : vector<16x2xf32> to vector<16x1xf32>
    %2 = vector.extract_strided_slice %0 {offsets = [0, 1], sizes = [16, 1], strides = [1, 1]} : vector<16x2xf32> to vector<16x1xf32>
    %c0_1 = arith.constant 0 : index
    %c0_2 = arith.constant 0 : index
    %3 = vector.load %arg2[%c0_1, %c0_2] : memref<8x128xf32, #tpu.memory_space<vmem>>, vector<1x128xf32>
    %4 = vector.broadcast %1 : vector<16x1xf32> to vector<16x128xf32>
    %5 = vector.broadcast %3 : vector<1x128xf32> to vector<16x128xf32>
    %6 = arith.subf %4, %5 : vector<16x128xf32>
    %c1 = arith.constant 1 : index
    %c0_3 = arith.constant 0 : index
    %7 = vector.load %arg2[%c1, %c0_3] : memref<8x128xf32, #tpu.memory_space<vmem>>, vector<1x128xf32>
    %8 = vector.broadcast %2 : vector<16x1xf32> to vector<16x128xf32>
    %9 = vector.broadcast %7 : vector<1x128xf32> to vector<16x128xf32>
    %10 = arith.subf %8, %9 : vector<16x128xf32>
    %c2 = arith.constant 2 : index
    %c0_4 = arith.constant 0 : index
    %11 = vector.load %arg2[%c2, %c0_4] : memref<8x128xf32, #tpu.memory_space<vmem>>, vector<1x128xf32>
    %12 = vector.broadcast %11 : vector<1x128xf32> to vector<16x128xf32>
    %13 = arith.mulf %6, %12 : vector<16x128xf32>
    %c3 = arith.constant 3 : index
    %c0_5 = arith.constant 0 : index
    %14 = vector.load %arg2[%c3, %c0_5] : memref<8x128xf32, #tpu.memory_space<vmem>>, vector<1x128xf32>
    %15 = vector.broadcast %14 : vector<1x128xf32> to vector<16x128xf32>
    %16 = arith.mulf %10, %15 : vector<16x128xf32>
    %17 = arith.mulf %6, %13 : vector<16x128xf32>
    %18 = arith.mulf %10, %16 : vector<16x128xf32>
    %19 = math.exp %17 : vector<16x128xf32>
    %20 = math.exp %18 : vector<16x128xf32>
    %cst = arith.constant -2.000000e+00 : f32
    %21 = vector.broadcast %cst : f32 to vector<16x128xf32>
    %22 = arith.mulf %21, %13 : vector<16x128xf32>
    %23 = arith.mulf %19, %22 : vector<16x128xf32>
    %cst_6 = arith.constant -2.000000e+00 : f32
    %24 = vector.broadcast %cst_6 : f32 to vector<16x128xf32>
    %25 = arith.mulf %24, %16 : vector<16x128xf32>
    %26 = arith.mulf %20, %25 : vector<16x128xf32>
    %c0_7 = arith.constant 0 : index
    %c0_8 = arith.constant 0 : index
    %27 = vector.load %arg3[%c0_7, %c0_8] : memref<128x128xf32, #tpu.memory_space<vmem>>, vector<128x128xf32>
    %cst_9 = arith.constant dense<0.000000e+00> : vector<16x128xf32>
    %28 = tpu.matmul %23, %27, %cst_9 {dimension_numbers = #tpu.dot_dimension_numbers<[1], [0], [0], [1], [0, 0, 1, 1], [], []>, precision = #tpu.contract_precision<fp32>} : vector<16x128xf32>, vector<128x128xf32>, vector<16x128xf32> -> vector<16x128xf32>
    %cst_10 = arith.constant dense<0.000000e+00> : vector<16x128xf32>
    %29 = tpu.matmul %19, %27, %cst_10 {dimension_numbers = #tpu.dot_dimension_numbers<[1], [0], [0], [1], [0, 0, 1, 1], [], []>, precision = #tpu.contract_precision<fp32>} : vector<16x128xf32>, vector<128x128xf32>, vector<16x128xf32> -> vector<16x128xf32>
    %30 = arith.mulf %28, %20 : vector<16x128xf32>
    %cst_11 = arith.constant dense<0.000000e+00> : vector<16xf32>
    %31 = vector.multi_reduction <add>, %30, %cst_11 [1] : vector<16x128xf32> to vector<16xf32>
    %32 = vector.shape_cast %31 : vector<16xf32> to vector<16x1xf32>
    %33 = arith.mulf %29, %26 : vector<16x128xf32>
    %cst_12 = arith.constant dense<0.000000e+00> : vector<16xf32>
    %34 = vector.multi_reduction <add>, %33, %cst_12 [1] : vector<16x128xf32> to vector<16xf32>
    %35 = vector.shape_cast %34 : vector<16xf32> to vector<16x1xf32>
    %36 = tpu.concatenate %32, %35 in 1 : vector<16x1xf32>, vector<16x1xf32> -> vector<16x2xf32>
    %c0_13 = arith.constant 0 : index
    %c0_14 = arith.constant 0 : index
    %37 = vector.load %arg4[%c0_13, %c0_14] : memref<16x2xf32, #tpu.memory_space<vmem>>, vector<16x2xf32>
    tpu.vector_store %arg4[%c0_13, %c0_14], %36 {strides = array<i32>} : memref<16x2xf32, #tpu.memory_space<vmem>>, vector<16x2xf32>,
    return
  }
  func.func @transform_0(%arg0: i32) -> (i32, i32) {
    %c0_i32 = arith.constant 0 : i32
    %c0_i32_0 = arith.constant 0 : i32
    return %arg0, %c0_i32 : i32, i32
  }
  func.func @transform_1(%arg0: i32) -> (i32, i32) {
    %c0_i32 = arith.constant 0 : i32
    %c0_i32_0 = arith.constant 0 : i32
    %c0_i32_1 = arith.constant 0 : i32
    return %c0_i32, %c0_i32_0 : i32, i32
  }
  func.func @transform_2(%arg0: i32) -> (i32, i32) {
    %c0_i32 = arith.constant 0 : i32
    %c0_i32_0 = arith.constant 0 : i32
    %c0_i32_1 = arith.constant 0 : i32
    return %c0_i32, %c0_i32_0 : i32, i32
  }
  func.func @transform_3(%arg0: i32) -> (i32, i32) {
    %c0_i32 = arith.constant 0 : i32
    %c0_i32_0 = arith.constant 0 : i32
    return %arg0, %c0_i32 : i32, i32
  }
}

</mosaic_0001>

<bundles_post_ra>
// kernel: tpu_custom_call.1
= control target key start
LH: loop header
LB: loop body
LE: loop exit
PB: predicated region body
PF: predicated region fallthrough
CT: control target
= control target key end

     0   :  { %8 = vsyncpa [#allocation3], 0  ;;  %s2181_s12 = smov [#allocation2]   ;;  %s2874_s0 = inlined_call_operand.vmem [shape: f32[16,2], index: 0, kind: input, shape index: {}]   ;;  %s2875_s1 = inlined_call_operand.vmem [shape: f32[8,128], index: 1, kind: input, shape index: {}]   ;;  %s2876_s2 = inlined_call_operand.hbm [shape: f32[128,128], index: 2, kind: input, shape index: {}]   ;;  %s2877_s3 = inlined_call_operand.vmem [shape: f32[16,2], index: 3, kind: output, shape index: {}]  }
   0x1   :  { %s18_s13 = sshll.u32 %s2181_s12, 4  ;;  %s19_s13 = int_to_ptr.vmem [resolvable:$true] %s18_s13 }
   0x2   :  { %s2167_s14 = scalar_lea.vmem %s19_s13, 2048  ;;  %p2172_p1 = scmp.lt.s32.totalorder %s19_s13, %s19_s13 }
   0x3   :  { %p2168_p0 = scmp.ne.s32.totalorder %s19_s13, %s2167_s14  ;;  %p2173_p2 = scmp.lt.s32.totalorder %s2167_s14, %s2167_s14 }
   0x5   :  { %p2174_p3 = por %p2173_p2, %p2172_p1 }
   0x7   :  { %p2175_p4 = pnand %p2174_p3, %p2168_p0 }
   0x9   :  { %2178 = shalt.err (!%p2175_p4)
}
   0xa   :  { %s2182_s15 = smov 128   ;;  %s2183_s16 = smov 8  }
   0xb   :  { %24 = dma.hbm_to_vmem [thread:$0]  %s2876_s2, 2048, %s19_s13, [#allocation3], %s2182_s15, %s2182_s15, %s2183_s16  }
   0xc   :  { %2179 = dma.done.wait [#allocation3], 2048  }
   0xd   :  { %2180 = vsyncadd [#allocation3], 4294965248  ;;  %v2184_v0 = vmov 0   ;;  %v2212_v1 = vld [vmem:[%s2874_s0] sm:$0xff]  ;;  %v111_v2 = vld [vmem:[#allocation2 + $0x78] sm:$0xff]  ;;  %vm1492_vm0 = vcmask 7168  }
   0xe   :  { %2148 = vset.pattern.permute.xlu0 %v2184_v0  ;;  %v2218_v3 = vld [vmem:[%s2874_s0 + $0x8] sm:$0xff]  ;;  %v2220_v4 = vand.u32 4294901760, %v111_v2  ;;  %v110_v5 = vld [vmem:[#allocation2 + $0x70] sm:$0xff]  ;;  %v108_v8 = vld [vmem:[#allocation2 + $0x60] sm:$0xff]  ;;  %vm1495_vm1 = vcmask 15360  }
   0xf   :  { %33 = vperm.xlu0 %2148, %v2212_v1   ;;  %v2222_v6 = vand.u32 4294901760, %v110_v5  ;;  %v109_v7 = vld [vmem:[#allocation2 + $0x68] sm:$0xff]  ;;  %v107_v9 = vld [vmem:[#allocation2 + $0x58] sm:$0xff]  ;;  %v2229_v12 = vand.u32 4294901760, %v108_v8  ;;  %v106_v14 = vld [vmem:[#allocation2 + $0x50] sm:$0xff] }
  0x10   :  { %v2225_v10 = vsub.f32 %v111_v2, %v2220_v4  ;;  %v2227_v11 = vand.u32 4294901760, %v109_v7  ;;  %1723 = vmatprep.subr.mxu0 %v2220_v4  ;;  %v2232_v13 = vand.u32 4294901760, %v107_v9  ;;  %v105_v15 = vld [vmem:[#allocation2 + $0x48] sm:$0xff]  ;;  %v104_v16 = vld [vmem:[#allocation2 + $0x40] sm:$0xff]  ;;  %v2238_v18 = vand.u32 4294901760, %v106_v14  ;;  %v103_v35 = vld [vmem:[#allocation2 + $0x38] sm:$0xff] }
  0x11   :  { %v2235_v17 = vsub.f32 %v110_v5, %v2222_v6  ;;  %1724 = vmatpush3.msra.mxu0 %v2220_v4  ;;  %v2240_v19 = vand.u32 4294901760, %v105_v15  ;;  %v2242_v20 = vand.u32 4294901760, %v104_v16  ;;  %v2252_v23 = vsub.f32 %v108_v8, %v2229_v12  ;;  %v102_v39 = vld [vmem:[#allocation2 + $0x30] sm:$0xff]  ;;  %v101_v42 = vld [vmem:[#allocation2 + $0x28] sm:$0xff]  ;;  %v100_v43 = vld [vmem:[#allocation2 + $0x20] sm:$0xff] }
  0x12   :  { %v2246_v21 = vand.u32 4294901760, %v2225_v10  ;;  %v2249_v22 = vsub.f32 %v109_v7, %v2227_v11  ;;  %v2255_v24 = vsub.f32 %v107_v9, %v2232_v13  ;;  %1725 = vmatprep.subr.mxu0 %v2222_v6  ;;  %v2262_v26 = vsub.f32 %v106_v14, %v2238_v18  ;;  %v99_v50 = vld [vmem:[#allocation2 + $0x18] sm:$0xff]  ;;  %v98_v57 = vld [vmem:[#allocation2 + $0x10] sm:$0xff]  ;;  %v97_v63 = vld [vmem:[#allocation2 + $0x8] sm:$0xff] }
  0x13   :  { %38 = vperm.xlu0 %2148, %v2218_v3   ;;  %v2259_v25 = vand.u32 4294901760, %v2235_v17  ;;  %1726 = vmatpush3.msra.mxu0 %v2222_v6  ;;  %v2266_v27 = vsub.f32 %v105_v15, %v2240_v19  ;;  %v2274_v30 = vand.u32 4294901760, %v2252_v23  ;;  %v2287_v34 = vsub.f32 %v104_v16, %v2242_v20  ;;  %v96_v9 = vld [vmem:[#allocation2] sm:$0xff] }
  0x14   :  { %v217_v28 = vsub.f32 %v2225_v10, %v2246_v21  ;;  %v2271_v29 = vand.u32 4294901760, %v2249_v22  ;;  %v2277_v31 = vand.u32 4294901760, %v2255_v24  ;;  %1727 = vmatprep.subr.mxu0 %v2227_v11  ;;  %v2283_v33 = vand.u32 4294901760, %v2262_v26 }
  0x15   :  { %v224_v32 = vsub.f32 %v2235_v17, %v2259_v25  ;;  %1728 = vmatpush3.msra.mxu0 %v2227_v11  ;;  %v238_v38 = vsub.f32 %v2252_v23, %v2274_v30  ;;  %v2299_v41 = vand.u32 4294901760, %v2266_v27  ;;  %v2308_v46 = vand.u32 4294901760, %v103_v35 }
  0x16   :  { %v2289_v36 = vand.u32 4294901760, %v217_v28  ;;  %v231_v37 = vsub.f32 %v2249_v22, %v2271_v29  ;;  %1729 = vmatprep.subr.mxu0 %v2229_v12  ;;  %v245_v45 = vsub.f32 %v2255_v24, %v2277_v31  ;;  %v252_v47 = vsub.f32 %v2262_v26, %v2283_v33 }
  0x17   :  { %v2296_v40 = vand.u32 4294901760, %v224_v32  ;;  %1730 = vmatpush3.msra.mxu0 %v2229_v12  ;;  %v2314_v48 = vand.u32 4294901760, %v2287_v34  ;;  %v2317_v49 = vand.u32 4294901760, %v102_v39  ;;  %v2320_v51 = vand.u32 4294901760, %v238_v38 }
  0x18   :  { %2918 = vst [vmem:[#allocation5_spill] sm:$0xff] %v2289_v36  ;;  %1758 = vmatprep.subr.mxu1 %v2289_v36  ;;  %v2303_v44 = vand.u32 4294901760, %v231_v37  ;;  %1731 = vmatprep.subr.mxu0 %v2232_v13  ;;  %v2323_v52 = vsub.f32 %v103_v35, %v2308_v46  ;;  %v2326_v53 = vand.u32 4294901760, %v101_v42  ;;  %v2328_v54 = vand.u32 4294901760, %v100_v43 }
  0x19   :  { %2919 = vst [vmem:[#allocation6_spill] sm:$0xff] %v2296_v40  ;;  %1759 = vmatpush3.msra.mxu1 %v2289_v36  ;;  %1732 = vmatpush3.msra.mxu0 %v2232_v13  ;;  %2921 = vst [vmem:[#allocation8_spill] sm:$0xff] %v2320_v51  ;;  %v259_v55 = vsub.f32 %v2266_v27, %v2299_v41  ;;  %v2334_v56 = vsub.f32 %v102_v39, %v2317_v49  ;;  %v2338_v58 = vand.u32 4294901760, %v245_v45 }
  0x1a   :  { %2920 = vst [vmem:[#allocation7_spill] sm:$0xff] %v2303_v44  ;;  %1760 = vmatprep.subr.mxu1 %v2296_v40  ;;  %1733 = vmatprep.subr.mxu0 %v2238_v18  ;;  %v2341_v59 = vand.u32 4294901760, %v2323_v52  ;;  %v2345_v60 = vsub.f32 %v101_v42, %v2326_v53  ;;  %v2347_v61 = vand.u32 4294901760, %v99_v50  ;;  %v266_v62 = vsub.f32 %v2287_v34, %v2314_v48 }
  0x1b   :  { %1761 = vmatpush3.msra.mxu1 %v2296_v40  ;;  %1734 = vmatpush3.msra.mxu0 %v2238_v18  ;;  %2922 = vst [vmem:[#allocation9_spill] sm:$0xff] %v2338_v58  ;;  %v2354_v0 = vand.u32 4294901760, %v252_v47  ;;  %v2357_v2 = vand.u32 4294901760, %v2334_v56  ;;  %v2361_v5 = vsub.f32 %v100_v43, %v2328_v54  ;;  %v2363_v7 = vand.u32 4294901760, %v98_v57 }
  0x1c   :  { %1762 = vmatprep.subr.mxu1 %v2303_v44  ;;  %1735 = vmatprep.subr.mxu0 %v2240_v19  ;;  %v2366_v8 = vand.u32 4294901760, %v259_v55  ;;  %v273_v14 = vsub.f32 %v2323_v52, %v2341_v59  ;;  %v2373_v15 = vand.u32 4294901760, %v2345_v60  ;;  %v2377_v16 = vsub.f32 %v99_v50, %v2347_v61 }
  0x1d   :  { %1763 = vmatpush3.msra.mxu1 %v2303_v44  ;;  %1736 = vmatpush3.msra.mxu0 %v2240_v19  ;;  %2923 = vst [vmem:[#allocation10_spill] sm:$0xff] %v2354_v0  ;;  %v2379_v28 = vand.u32 4294901760, %v97_v63  ;;  %v2382_v32 = vand.u32 4294901760, %v266_v62  ;;  %v280_v35 = vsub.f32 %v2334_v56, %v2357_v2  ;;  %v2389_v37 = vand.u32 4294901760, %v2361_v5 }
  0x1e   :  { %1764 = vmatprep.subr.mxu1 %v2320_v51  ;;  %1737 = vmatprep.subr.mxu0 %v2242_v20  ;;  %2924 = vst [vmem:[#allocation11_spill] sm:$0xff] %v2366_v8  ;;  %v2393_v38 = vsub.f32 %v98_v57, %v2363_v7  ;;  %v2395_v39 = vand.u32 4294901760, %v96_v9  ;;  %v2400_v42 = vand.u32 4294901760, %v273_v14  ;;  %v287_v43 = vsub.f32 %v2345_v60, %v2373_v15 }
  0x1f   :  { %1765 = vmatpush3.msra.mxu1 %v2320_v51  ;;  %1738 = vmatpush3.msra.mxu0 %v2242_v20  ;;  %2925 = vst [vmem:[#allocation12_spill] sm:$0xff] %v2382_v32  ;;  %v2405_v45 = vand.u32 4294901760, %v2377_v16  ;;  %v2409_v47 = vsub.f32 %v97_v63, %v2379_v28  ;;  %v2414_v50 = vand.u32 4294901760, %v280_v35  ;;  %v294_v55 = vsub.f32 %v2361_v5, %v2389_v37 }
  0x20   :  { %1766 = vmatprep.subr.mxu1 %v2338_v58  ;;  %1739 = vmatprep.subr.mxu0 %v2308_v46  ;;  %2926 = vst [vmem:[#allocation13_spill] sm:$0xff] %v2400_v42  ;;  %v2419_v57 = vand.u32 4294901760, %v2393_v38  ;;  %v2423_v62 = vsub.f32 %v96_v9, %v2395_v39  ;;  %v2428_v63 = vand.u32 4294901760, %v287_v43 }
  0x21   :  { %1767 = vmatpush3.msra.mxu1 %v2338_v58  ;;  %1740 = vmatpush3.msra.mxu0 %v2308_v46  ;;  %2927 = vst [vmem:[#allocation14_spill] sm:$0xff] %v2405_v45  ;;  %2928 = vst [vmem:[#allocation15_spill] sm:$0xff] %v2414_v50  ;;  %v301_v14 = vsub.f32 %v2377_v16, %v2405_v45  ;;  %v2433_v35 = vand.u32 4294901760, %v2409_v47  ;;  %v2439_v9 = vand.u32 4294901760, %v294_v55 }
  0x22   :  { %1768 = vmatprep.subr.mxu1 %v2354_v0  ;;  %1741 = vmatprep.subr.mxu0 %v2317_v49  ;;  %2929 = vst [vmem:[#allocation16_spill] sm:$0xff] %v2419_v57  ;;  %2930 = vst [vmem:[#allocation17_spill] sm:$0xff] %v2428_v63  ;;  %v308_v43 = vsub.f32 %v2393_v38, %v2419_v57 }
  0x23   :  { %1769 = vmatpush3.msra.mxu1 %v2354_v0  ;;  %1742 = vmatpush3.msra.mxu0 %v2317_v49  ;;  %2931 = vst [vmem:[#allocation18_spill] sm:$0xff] %v2433_v35  ;;  %2932 = vst [vmem:[#allocation19_spill] sm:$0xff] %v2439_v9  ;;  %v315_v55 = vsub.f32 %v2409_v47, %v2433_v35 }
  0x24   :  { %1770 = vmatprep.subr.mxu1 %v2366_v8  ;;  %1743 = vmatprep.subr.mxu0 %v2326_v53 }
  0x25   :  { %1771 = vmatpush3.msra.mxu1 %v2366_v8  ;;  %1744 = vmatpush3.msra.mxu0 %v2326_v53  ;;  %v2458_v8 = vand.u32 4294901760, %v308_v43 }
  0x26   :  { %1772 = vmatprep.subr.mxu1 %v2382_v32  ;;  %1745 = vmatprep.subr.mxu0 %v2328_v54 }
  0x27   :  { %1773 = vmatpush3.msra.mxu1 %v2382_v32  ;;  %1746 = vmatpush3.msra.mxu0 %v2328_v54  ;;  %v2444_v32 = vand.u32 4294901760, %v2423_v62  ;;  %2935 = vst [vmem:[#allocation22_spill] sm:$0xff] %v2458_v8 }
  0x28   :  { %1774 = vmatprep.subr.mxu1 %v2400_v42  ;;  %1747 = vmatprep.subr.mxu0 %v2347_v61 }
  0x29   :  { %1775 = vmatpush3.msra.mxu1 %v2400_v42  ;;  %1748 = vmatpush3.msra.mxu0 %v2347_v61  ;;  %2933 = vst [vmem:[#allocation20_spill] sm:$0xff] %v2444_v32  ;;  %v2450_v42 = vand.u32 4294901760, %v301_v14  ;;  %v2466_v14 = vand.u32 4294901760, %v315_v55  ;;  %v1503_v55 = vld [vmem:[%s2875_s1] ss:$0 sm:$0xff] }
  0x2a   :  { %1776 = vmatprep.subr.mxu1 %v2414_v50  ;;  %1749 = vmatprep.subr.mxu0 %v2363_v7 }
  0x2b   :  { %1777 = vmatpush3.msra.mxu1 %v2414_v50  ;;  %1750 = vmatpush3.msra.mxu0 %v2363_v7  ;;  %2934 = vst [vmem:[#allocation21_spill] sm:$0xff] %v2450_v42  ;;  %v322_v50 = vsub.f32 %v2423_v62, %v2444_v32  ;;  %2936 = vst [vmem:[#allocation23_spill] sm:$0xff] %v2466_v14 }
  0x2c   :  { %1778 = vmatprep.subr.mxu1 %v2428_v63  ;;  %1751 = vmatprep.subr.mxu0 %v2379_v28 }
  0x2d   :  { %1779 = vmatpush3.msra.mxu1 %v2428_v63  ;;  %1752 = vmatpush3.msra.mxu0 %v2379_v28  ;;  %v2471_v43 = vand.u32 4294901760, %v322_v50  ;;  %v1505_v50 = vld [vmem:[%s2875_s1 + $0x2] ss:$0 sm:$0xff] }
  0x2e   :  { %1780 = vmatprep.subr.mxu1 %v2439_v9  ;;  %1753 = vmatprep.subr.mxu0 %v2395_v39 }
  0x2f   :  { %1781 = vmatpush3.msra.mxu1 %v2439_v9  ;;  %1754 = vmatpush3.msra.mxu0 %v2395_v39  ;;  %2937 = vst [vmem:[#allocation24_spill] sm:$0xff] %v2471_v43 }
  0x30   :  { %1782 = vmatprep.subr.mxu1 %v2450_v42  ;;  %1793 = vmatprep.subr.mxu0 %v2225_v10 }
  0x31   :  { %1783 = vmatpush3.msra.mxu1 %v2450_v42 }
  0x32   :  { %1784 = vmatprep.subr.mxu1 %v2458_v8 }
  0x33   :  { %1785 = vmatpush3.msra.mxu1 %v2458_v8 }
  0x34   :  { %1786 = vmatprep.subr.mxu1 %v2466_v14 }
  0x35   :  { %1787 = vmatpush3.msra.mxu1 %v2466_v14 }
  0x36   :  { %1788 = vmatprep.subr.mxu1 %v2471_v43 }
  0x37   :  { %1789 = vmatpush3.msra.mxu1 %v2471_v43 }
  0x38   :  { %1828 = vmatprep.subr.mxu1 %v2220_v4 }
  0x8a   :  { %v34_v42 = vpop.permute.xlu0 %33 }
  0x8b   :  { %v45_v8 = vsub.f32 %v34_v42, %v1503_v55 }
  0x8d   :  { %v67_v9 = vmul.f32 %v1505_v50, %v45_v8 }
  0x8e   :  { %v39_v63 = vpop.permute.xlu0 %38 }
  0x8f   :  { %v76_v0 = vmul.f32 %v67_v9, %v45_v8  ;;  %v46_v14 = vsub.f32 %v39_v63, %v1503_v55  ;;  %v88_v44 = vmul.f32 -2.0, %v67_v9  ;;  %v2938_v9 = vld [vmem:[#allocation14_spill] sm:$0xff] }
  0x90   :  { %v2941_v55 = vld [vmem:[#allocation6_spill] sm:$0xff] }
  0x91   :  { %v80_v58 = vmul.f32 1.442695, %v76_v0  ;;  %v68_v51 = vmul.f32 %v1505_v50, %v46_v14  ;;  %v2942_v50 = vld [vmem:[#allocation18_spill] sm:$0xff] }
  0x93   :  { %2151 = vpow2.f32 %v80_v58  ;;  %v77_v43 = vmul.f32 %v68_v51, %v46_v14  ;;  %v89_v57 = vmul.f32 -2.0, %v68_v51  ;;  %v2939_v14 = vld [vmem:[#allocation5_spill] sm:$0xff] }
  0x95   :  { %v82_v32 = vmul.f32 1.442695, %v77_v43 }
  0x97   :  { %2153 = vpow2.f32 %v82_v32  ;;  %v2185_v32 = vmov 1  }
  0x98   :  { %2149 = vset.pattern.permute.xlu1 %v2185_v32  ;;  %2150 = vset.pattern.permute.xlu0 %v2185_v32  ;;  %v2945_v32 = vld [vmem:[#allocation8_spill] sm:$0xff] }
  0x99   :  { %49 = vperm.xlu1 %2149, %v2212_v1  }
  0x9d   :  { %53 = vperm.xlu1 %2149, %v2218_v3  }
  0xa0   :  { %v2485_v35 = vpop.eup %2151 }
  0xa1   :  { %v90_v40 = vmul.f32 %v2485_v35, %v88_v44  ;;  %v2614_v3 = vand.u32 4294901760, %v2485_v35 }
  0xa3   :  { %v2488_v36 = vand.u32 4294901760, %v90_v40 }
  0xa4   :  { %v2490_v45 = vpop.eup %2153 }
  0xa5   :  { %v91_v42 = vmul.f32 %v2490_v45, %v89_v57  ;;  %1790 = vmatprep.mubr.f32.mxu1 %v2488_v36  ;;  %v194_v0 = vsub.f32 %v90_v40, %v2488_v36 }
  0xa7   :  { %v2495_v58 = vand.u32 4294901760, %v91_v42  ;;  %v195_v8 = vand.u32 4294901760, %v194_v0 }
  0xa9   :  { %1791 = vmatmul.mubr.f32.vlgmr.msra.gmra.mxu1 %v2495_v58  ;;  %v196_v44 = vsub.f32 %v194_v0, %v195_v8  ;;  %v2500_v51 = vsub.f32 %v91_v42, %v2495_v58 }
  0xaa   :  { %1829 = vmatpush3.msra.mxu1 %v2220_v4  ;;  %1860 = vmatprep.mubr.f32.mxu1 %v195_v8  ;;  %v2944_v8 = vld [vmem:[#allocation20_spill] sm:$0xff] }
  0xab   :  { %1830 = vmatprep.subr.mxu1 %v2222_v6  ;;  %v197_v40 = vand.u32 4294901760, %v196_v44  ;;  %v205_v57 = vand.u32 4294901760, %v2500_v51 }
  0xac   :  { %1831 = vmatpush3.msra.mxu1 %v2222_v6 }
  0xad   :  { %1832 = vmatprep.subr.mxu1 %v2227_v11  ;;  %1755 = vmatprep.mubr.f32.mxu0 %v197_v40  ;;  %v206_v1 = vsub.f32 %v2500_v51, %v205_v57  ;;  %v2947_v40 = vld [vmem:[#allocation10_spill] sm:$0xff] }
  0xae   :  { %1833 = vmatpush3.msra.mxu1 %v2227_v11 }
  0xaf   :  { %1834 = vmatprep.subr.mxu1 %v2229_v12  ;;  %v207_v63 = vand.u32 4294901760, %v206_v1  ;;  %v2950_v1 = vld [vmem:[#allocation13_spill] sm:$0xff] }
  0xb0   :  { %1835 = vmatpush3.msra.mxu1 %v2229_v12 }
  0xb1   :  { %1836 = vmatprep.subr.mxu1 %v2232_v13  ;;  %1756 = vmatmul.mubr.f32.vlgmr.msra.gmra.mxu0 %v207_v63  ;;  %v2951_v63 = vld [vmem:[#allocation15_spill] sm:$0xff] }
  0xb2   :  { %1794 = vmatpush3.msra.mxu0 %v2225_v10  ;;  %1837 = vmatpush3.msra.mxu1 %v2232_v13 }
  0xb3   :  { %1795 = vmatprep.subr.mxu0 %v2235_v17  ;;  %1825 = vmatprep.mubr.f32.mxu0 %v194_v0  ;;  %v2943_v0 = vld [vmem:[#allocation7_spill] sm:$0xff] }
  0xb4   :  { %1838 = vmatprep.subr.mxu1 %v2238_v18  ;;  %1796 = vmatpush3.msra.mxu0 %v2235_v17 }
  0xb5   :  { %1839 = vmatpush3.msra.mxu1 %v2238_v18  ;;  %1797 = vmatprep.subr.mxu0 %v2249_v22 }
  0xb6   :  { %1840 = vmatprep.subr.mxu1 %v2240_v19  ;;  %1798 = vmatpush3.msra.mxu0 %v2249_v22 }
  0xb7   :  { %1841 = vmatpush3.msra.mxu1 %v2240_v19  ;;  %1799 = vmatprep.subr.mxu0 %v2252_v23 }
  0xb8   :  { %1842 = vmatprep.subr.mxu1 %v2242_v20  ;;  %1800 = vmatpush3.msra.mxu0 %v2252_v23 }
  0xb9   :  { %1843 = vmatpush3.msra.mxu1 %v2242_v20  ;;  %1801 = vmatprep.subr.mxu0 %v2255_v24 }
  0xba   :  { %1844 = vmatprep.subr.mxu1 %v2308_v46  ;;  %1802 = vmatpush3.msra.mxu0 %v2255_v24 }
  0xbb   :  { %1845 = vmatpush3.msra.mxu1 %v2308_v46  ;;  %1803 = vmatprep.subr.mxu0 %v2262_v26 }
  0xbc   :  { %1846 = vmatprep.subr.mxu1 %v2317_v49  ;;  %1804 = vmatpush3.msra.mxu0 %v2262_v26 }
  0xbd   :  { %1847 = vmatpush3.msra.mxu1 %v2317_v49  ;;  %1805 = vmatprep.subr.mxu0 %v2266_v27 }
  0xbe   :  { %1848 = vmatprep.subr.mxu1 %v2326_v53  ;;  %1806 = vmatpush3.msra.mxu0 %v2266_v27 }
  0xbf   :  { %1849 = vmatpush3.msra.mxu1 %v2326_v53  ;;  %1807 = vmatprep.subr.mxu0 %v2287_v34 }
  0xc0   :  { %1850 = vmatprep.subr.mxu1 %v2328_v54  ;;  %1808 = vmatpush3.msra.mxu0 %v2287_v34 }
  0xc1   :  { %1851 = vmatpush3.msra.mxu1 %v2328_v54  ;;  %1809 = vmatprep.subr.mxu0 %v2323_v52 }
  0xc2   :  { %1852 = vmatprep.subr.mxu1 %v2347_v61  ;;  %1810 = vmatpush3.msra.mxu0 %v2323_v52 }
  0xc3   :  { %1853 = vmatpush3.msra.mxu1 %v2347_v61  ;;  %1811 = vmatprep.subr.mxu0 %v2334_v56 }
  0xc4   :  { %1854 = vmatprep.subr.mxu1 %v2363_v7  ;;  %1812 = vmatpush3.msra.mxu0 %v2334_v56 }
  0xc5   :  { %1855 = vmatpush3.msra.mxu1 %v2363_v7  ;;  %1813 = vmatprep.subr.mxu0 %v2345_v60 }
  0xc6   :  { %1856 = vmatprep.subr.mxu1 %v2379_v28  ;;  %1814 = vmatpush3.msra.mxu0 %v2345_v60 }
  0xc7   :  { %1857 = vmatpush3.msra.mxu1 %v2379_v28  ;;  %1815 = vmatprep.subr.mxu0 %v2361_v5 }
  0xc8   :  { %1858 = vmatprep.subr.mxu1 %v2395_v39  ;;  %1816 = vmatpush3.msra.mxu0 %v2361_v5 }
  0xc9   :  { %1859 = vmatpush3.msra.mxu1 %v2395_v39  ;;  %1817 = vmatprep.subr.mxu0 %v2377_v16 }
  0xca   :  { %1861 = vmatmul.mubr.f32.vlgmr.msra.gmra.mxu1 %v205_v57  ;;  %1898 = vmatprep.subr.mxu1 %v2220_v4  ;;  %v2949_v57 = vld [vmem:[#allocation12_spill] sm:$0xff] }
  0xcb   :  { %1818 = vmatpush3.msra.mxu0 %v2377_v16  ;;  %1899 = vmatpush3.msra.mxu1 %v2220_v4 }
  0xcc   :  { %1930 = vmatprep.mubr.f32.mxu1 %v2488_v36  ;;  %1819 = vmatprep.subr.mxu0 %v2393_v38 }
  0xcd   :  { %1900 = vmatprep.subr.mxu1 %v2222_v6  ;;  %1820 = vmatpush3.msra.mxu0 %v2393_v38 }
  0xce   :  { %1901 = vmatpush3.msra.mxu1 %v2222_v6  ;;  %1821 = vmatprep.subr.mxu0 %v2409_v47 }
  0xcf   :  { %1902 = vmatprep.subr.mxu1 %v2227_v11  ;;  %1822 = vmatpush3.msra.mxu0 %v2409_v47 }
  0xd0   :  { %1903 = vmatpush3.msra.mxu1 %v2227_v11  ;;  %1823 = vmatprep.subr.mxu0 %v2423_v62 }
  0xd1   :  { %1904 = vmatprep.subr.mxu1 %v2229_v12  ;;  %1824 = vmatpush3.msra.mxu0 %v2423_v62 }
  0xd2   :  { %1905 = vmatpush3.msra.mxu1 %v2229_v12  ;;  %1826 = vmatmul.mubr.f32.vlgmr.msra.gmra.mxu0 %v2500_v51  ;;  %v2946_v51 = vld [vmem:[#allocation9_spill] sm:$0xff] }
  0xd3   :  { %1863 = vmatprep.subr.mxu0 %v2246_v21  ;;  %1906 = vmatprep.subr.mxu1 %v2232_v13 }
  0xd4   :  { %1864 = vmatpush3.msra.mxu0 %v2246_v21  ;;  %1895 = vmatprep.mubr.f32.mxu0 %v2488_v36  ;;  %v2626_v36 = vsub.f32 %v2485_v35, %v2614_v3  ;;  %v2940_v35 = vld [vmem:[#allocation16_spill] sm:$0xff] }
  0xd5   :  { %1907 = vmatpush3.msra.mxu1 %v2232_v13  ;;  %1865 = vmatprep.subr.mxu0 %v2259_v25 }
  0xd6   :  { %1908 = vmatprep.subr.mxu1 %v2238_v18  ;;  %1866 = vmatpush3.msra.mxu0 %v2259_v25  ;;  %v879_v43 = vand.u32 4294901760, %v2626_v36 }
  0xd7   :  { %1909 = vmatpush3.msra.mxu1 %v2238_v18  ;;  %1867 = vmatprep.subr.mxu0 %v2271_v29 }
  0xd8   :  { %1910 = vmatprep.subr.mxu1 %v2240_v19  ;;  %1868 = vmatpush3.msra.mxu0 %v2271_v29  ;;  %v880_v42 = vsub.f32 %v2626_v36, %v879_v43 }
  0xd9   :  { %1911 = vmatpush3.msra.mxu1 %v2240_v19  ;;  %1869 = vmatprep.subr.mxu0 %v2274_v30 }
  0xda   :  { %1912 = vmatprep.subr.mxu1 %v2242_v20  ;;  %1870 = vmatpush3.msra.mxu0 %v2274_v30  ;;  %v881_v44 = vand.u32 4294901760, %v880_v42  ;;  %v2688_v42 = vand.u32 4294901760, %v2490_v45 }
  0xdb   :  { %1913 = vmatpush3.msra.mxu1 %v2242_v20  ;;  %1871 = vmatprep.subr.mxu0 %v2277_v31 }
  0xdc   :  { %1914 = vmatprep.subr.mxu1 %v2308_v46  ;;  %1872 = vmatpush3.msra.mxu0 %v2277_v31 }
  0xdd   :  { %1915 = vmatpush3.msra.mxu1 %v2308_v46  ;;  %1873 = vmatprep.subr.mxu0 %v2283_v33 }
  0xde   :  { %1916 = vmatprep.subr.mxu1 %v2317_v49  ;;  %1874 = vmatpush3.msra.mxu0 %v2283_v33 }
  0xdf   :  { %1917 = vmatpush3.msra.mxu1 %v2317_v49  ;;  %1875 = vmatprep.subr.mxu0 %v2299_v41 }
  0xe0   :  { %1918 = vmatprep.subr.mxu1 %v2326_v53  ;;  %1876 = vmatpush3.msra.mxu0 %v2299_v41 }
  0xe1   :  { %1919 = vmatpush3.msra.mxu1 %v2326_v53  ;;  %1877 = vmatprep.subr.mxu0 %v2314_v48 }
  0xe2   :  { %1920 = vmatprep.subr.mxu1 %v2328_v54  ;;  %1878 = vmatpush3.msra.mxu0 %v2314_v48 }
  0xe3   :  { %1921 = vmatpush3.msra.mxu1 %v2328_v54  ;;  %1879 = vmatprep.subr.mxu0 %v2341_v59 }
  0xe4   :  { %1922 = vmatprep.subr.mxu1 %v2347_v61  ;;  %1880 = vmatpush3.msra.mxu0 %v2341_v59 }
  0xe5   :  { %1923 = vmatpush3.msra.mxu1 %v2347_v61  ;;  %1881 = vmatprep.subr.mxu0 %v2357_v2 }
  0xe6   :  { %1924 = vmatprep.subr.mxu1 %v2363_v7  ;;  %1882 = vmatpush3.msra.mxu0 %v2357_v2 }
  0xe7   :  { %1925 = vmatpush3.msra.mxu1 %v2363_v7  ;;  %1883 = vmatprep.subr.mxu0 %v2373_v15 }
  0xe8   :  { %1926 = vmatprep.subr.mxu1 %v2379_v28  ;;  %1884 = vmatpush3.msra.mxu0 %v2373_v15 }
  0xe9   :  { %1927 = vmatpush3.msra.mxu1 %v2379_v28  ;;  %1885 = vmatprep.subr.mxu0 %v2389_v37 }
  0xea   :  { %1928 = vmatprep.subr.mxu1 %v2395_v39  ;;  %1886 = vmatpush3.msra.mxu0 %v2389_v37 }
  0xeb   :  { %1929 = vmatpush3.msra.mxu1 %v2395_v39  ;;  %1887 = vmatprep.subr.mxu0 %v2938_v9 }
  0xec   :  { %1931 = vmatmul.mubr.f32.vlgmr.msra.gmra.mxu1 %v2495_v58  ;;  %1968 = vmatprep.subr.mxu1 %v2939_v14 }
  0xed   :  { %1888 = vmatpush3.msra.mxu0 %v2938_v9  ;;  %1969 = vmatpush3.msra.mxu1 %v2939_v14  ;;  %v2952_v14 = vld [vmem:[#allocation17_spill] sm:$0xff] }
  0xee   :  { %2000 = vmatprep.mubr.f32.mxu1 %v2614_v3  ;;  %1889 = vmatprep.subr.mxu0 %v2940_v35 }
  0xef   :  { %1970 = vmatprep.subr.mxu1 %v2941_v55  ;;  %1890 = vmatpush3.msra.mxu0 %v2940_v35 }
  0xf0   :  { %1971 = vmatpush3.msra.mxu1 %v2941_v55  ;;  %1891 = vmatprep.subr.mxu0 %v2942_v50  ;;  %v2953_v55 = vld [vmem:[#allocation19_spill] sm:$0xff] }
  0xf1   :  { %1972 = vmatprep.subr.mxu1 %v2943_v0  ;;  %1892 = vmatpush3.msra.mxu0 %v2942_v50 }
  0xf2   :  { %1973 = vmatpush3.msra.mxu1 %v2943_v0  ;;  %1893 = vmatprep.subr.mxu0 %v2944_v8  ;;  %v2954_v0 = vld [vmem:[#allocation21_spill] sm:$0xff] }
  0xf3   :  { %1974 = vmatprep.subr.mxu1 %v2945_v32  ;;  %1894 = vmatpush3.msra.mxu0 %v2944_v8 }
  0xf4   :  { %1975 = vmatpush3.msra.mxu1 %v2945_v32  ;;  %1896 = vmatmul.mubr.f32.vlgmr.msra.gmra.mxu0 %v2495_v58  ;;  %v2948_v58 = vld [vmem:[#allocation11_spill] sm:$0xff]  ;;  %v2955_v32 = vld [vmem:[#allocation22_spill] sm:$0xff] }
  0xf5   :  { %1933 = vmatprep.subr.mxu0 %v2220_v4  ;;  %1976 = vmatprep.subr.mxu1 %v2946_v51 }
  0xf6   :  { %1934 = vmatpush3.msra.mxu0 %v2220_v4  ;;  %1965 = vmatprep.mubr.f32.mxu0 %v881_v44  ;;  %v2700_v44 = vsub.f32 %v2490_v45, %v2688_v42 }
  0xf7   :  { %1977 = vmatpush3.msra.mxu1 %v2946_v51  ;;  %1935 = vmatprep.subr.mxu0 %v2222_v6  ;;  %v2956_v51 = vld [vmem:[#allocation23_spill] sm:$0xff] }
  0xf8   :  { %1978 = vmatprep.subr.mxu1 %v2947_v40  ;;  %1936 = vmatpush3.msra.mxu0 %v2222_v6 }
  0xf9   :  { %1979 = vmatpush3.msra.mxu1 %v2947_v40  ;;  %1937 = vmatprep.subr.mxu0 %v2227_v11  ;;  %v2957_v40 = vld [vmem:[#allocation24_spill] sm:$0xff] }
  0xfa   :  { %1980 = vmatprep.subr.mxu1 %v2948_v58  ;;  %1938 = vmatpush3.msra.mxu0 %v2227_v11 }
  0xfb   :  { %1981 = vmatpush3.msra.mxu1 %v2948_v58  ;;  %1939 = vmatprep.subr.mxu0 %v2229_v12  ;;  %v889_v58 = vand.u32 4294901760, %v2700_v44 }
  0xfc   :  { %1982 = vmatprep.subr.mxu1 %v2949_v57  ;;  %1940 = vmatpush3.msra.mxu0 %v2229_v12 }
  0xfd   :  { %1983 = vmatpush3.msra.mxu1 %v2949_v57  ;;  %1941 = vmatprep.subr.mxu0 %v2232_v13  ;;  %v890_v45 = vsub.f32 %v2700_v44, %v889_v58 }
  0xfe   :  { %1984 = vmatprep.subr.mxu1 %v2950_v1  ;;  %1942 = vmatpush3.msra.mxu0 %v2232_v13 }
  0xff   :  { %1985 = vmatpush3.msra.mxu1 %v2950_v1  ;;  %1943 = vmatprep.subr.mxu0 %v2238_v18 }
 0x100   :  { %1986 = vmatprep.subr.mxu1 %v2951_v63  ;;  %1944 = vmatpush3.msra.mxu0 %v2238_v18 }
 0x101   :  { %1987 = vmatpush3.msra.mxu1 %v2951_v63  ;;  %1945 = vmatprep.subr.mxu0 %v2240_v19 }
 0x102   :  { %1988 = vmatprep.subr.mxu1 %v2952_v14  ;;  %1946 = vmatpush3.msra.mxu0 %v2240_v19 }
 0x103   :  { %1989 = vmatpush3.msra.mxu1 %v2952_v14  ;;  %1947 = vmatprep.subr.mxu0 %v2242_v20 }
 0x104   :  { %1990 = vmatprep.subr.mxu1 %v2953_v55  ;;  %1948 = vmatpush3.msra.mxu0 %v2242_v20 }
 0x105   :  { %1991 = vmatpush3.msra.mxu1 %v2953_v55  ;;  %1949 = vmatprep.subr.mxu0 %v2308_v46 }
 0x106   :  { %1992 = vmatprep.subr.mxu1 %v2954_v0  ;;  %1950 = vmatpush3.msra.mxu0 %v2308_v46 }
 0x107   :  { %1993 = vmatpush3.msra.mxu1 %v2954_v0  ;;  %1951 = vmatprep.subr.mxu0 %v2317_v49 }
 0x108   :  { %1994 = vmatprep.subr.mxu1 %v2955_v32  ;;  %1952 = vmatpush3.msra.mxu0 %v2317_v49 }
 0x109   :  { %1995 = vmatpush3.msra.mxu1 %v2955_v32  ;;  %1953 = vmatprep.subr.mxu0 %v2326_v53 }
 0x10a   :  { %1996 = vmatprep.subr.mxu1 %v2956_v51  ;;  %1954 = vmatpush3.msra.mxu0 %v2326_v53 }
 0x10b   :  { %1997 = vmatpush3.msra.mxu1 %v2956_v51  ;;  %1955 = vmatprep.subr.mxu0 %v2328_v54 }
 0x10c   :  { %1998 = vmatprep.subr.mxu1 %v2957_v40  ;;  %1956 = vmatpush3.msra.mxu0 %v2328_v54 }
 0x10d   :  { %1999 = vmatpush3.msra.mxu1 %v2957_v40  ;;  %1957 = vmatprep.subr.mxu0 %v2347_v61 }
 0x10e   :  { %2001 = vmatmul.mubr.f32.vlgmr.msra.gmra.mxu1 %v2688_v42  ;;  %2038 = vmatprep.subr.mxu1 %v2220_v4 }
 0x10f   :  { %1958 = vmatpush3.msra.mxu0 %v2347_v61  ;;  %2039 = vmatpush3.msra.mxu1 %v2220_v4 }
 0x110   :  { %2070 = vmatprep.mubr.f32.mxu1 %v879_v43  ;;  %1959 = vmatprep.subr.mxu0 %v2363_v7  ;;  %v891_v43 = vand.u32 4294901760, %v890_v45 }
 0x111   :  { %2040 = vmatprep.subr.mxu1 %v2222_v6  ;;  %1960 = vmatpush3.msra.mxu0 %v2363_v7 }
 0x112   :  { %2041 = vmatpush3.msra.mxu1 %v2222_v6  ;;  %1961 = vmatprep.subr.mxu0 %v2379_v28 }
 0x113   :  { %2042 = vmatprep.subr.mxu1 %v2227_v11  ;;  %1962 = vmatpush3.msra.mxu0 %v2379_v28 }
 0x114   :  { %2043 = vmatpush3.msra.mxu1 %v2227_v11  ;;  %1963 = vmatprep.subr.mxu0 %v2395_v39 }
 0x115   :  { %2044 = vmatprep.subr.mxu1 %v2229_v12  ;;  %1964 = vmatpush3.msra.mxu0 %v2395_v39 }
 0x116   :  { %2045 = vmatpush3.msra.mxu1 %v2229_v12  ;;  %1966 = vmatmul.mubr.f32.vlgmr.msra.gmra.mxu0 %v891_v43 }
 0x117   :  { %2003 = vmatprep.subr.mxu0 %v2225_v10  ;;  %2046 = vmatprep.subr.mxu1 %v2232_v13 }
 0x118   :  { %2004 = vmatpush3.msra.mxu0 %v2225_v10  ;;  %2035 = vmatprep.mubr.f32.mxu0 %v2626_v36 }
 0x119   :  { %2047 = vmatpush3.msra.mxu1 %v2232_v13  ;;  %2005 = vmatprep.subr.mxu0 %v2235_v17 }
 0x11a   :  { %2048 = vmatprep.subr.mxu1 %v2238_v18  ;;  %2006 = vmatpush3.msra.mxu0 %v2235_v17 }
 0x11b   :  { %2049 = vmatpush3.msra.mxu1 %v2238_v18  ;;  %2007 = vmatprep.subr.mxu0 %v2249_v22 }
 0x11c   :  { %2050 = vmatprep.subr.mxu1 %v2240_v19  ;;  %2008 = vmatpush3.msra.mxu0 %v2249_v22 }
 0x11d   :  { %2051 = vmatpush3.msra.mxu1 %v2240_v19  ;;  %2009 = vmatprep.subr.mxu0 %v2252_v23 }
 0x11e   :  { %2052 = vmatprep.subr.mxu1 %v2242_v20  ;;  %2010 = vmatpush3.msra.mxu0 %v2252_v23 }
 0x11f   :  { %2053 = vmatpush3.msra.mxu1 %v2242_v20  ;;  %2011 = vmatprep.subr.mxu0 %v2255_v24 }
 0x120   :  { %2054 = vmatprep.subr.mxu1 %v2308_v46  ;;  %2012 = vmatpush3.msra.mxu0 %v2255_v24 }
 0x121   :  { %2055 = vmatpush3.msra.mxu1 %v2308_v46  ;;  %2013 = vmatprep.subr.mxu0 %v2262_v26 }
 0x122   :  { %2056 = vmatprep.subr.mxu1 %v2317_v49  ;;  %2014 = vmatpush3.msra.mxu0 %v2262_v26 }
 0x123   :  { %2057 = vmatpush3.msra.mxu1 %v2317_v49  ;;  %2015 = vmatprep.subr.mxu0 %v2266_v27 }
 0x124   :  { %2058 = vmatprep.subr.mxu1 %v2326_v53  ;;  %2016 = vmatpush3.msra.mxu0 %v2266_v27 }
 0x125   :  { %2059 = vmatpush3.msra.mxu1 %v2326_v53  ;;  %2017 = vmatprep.subr.mxu0 %v2287_v34 }
 0x126   :  { %2060 = vmatprep.subr.mxu1 %v2328_v54  ;;  %2018 = vmatpush3.msra.mxu0 %v2287_v34 }
 0x127   :  { %2061 = vmatpush3.msra.mxu1 %v2328_v54  ;;  %2019 = vmatprep.subr.mxu0 %v2323_v52 }
 0x128   :  { %2062 = vmatprep.subr.mxu1 %v2347_v61  ;;  %2020 = vmatpush3.msra.mxu0 %v2323_v52 }
 0x129   :  { %2063 = vmatpush3.msra.mxu1 %v2347_v61  ;;  %2021 = vmatprep.subr.mxu0 %v2334_v56 }
 0x12a   :  { %2064 = vmatprep.subr.mxu1 %v2363_v7  ;;  %2022 = vmatpush3.msra.mxu0 %v2334_v56 }
 0x12b   :  { %2065 = vmatpush3.msra.mxu1 %v2363_v7  ;;  %2023 = vmatprep.subr.mxu0 %v2345_v60 }
 0x12c   :  { %2066 = vmatprep.subr.mxu1 %v2379_v28  ;;  %2024 = vmatpush3.msra.mxu0 %v2345_v60 }
 0x12d   :  { %2067 = vmatpush3.msra.mxu1 %v2379_v28  ;;  %2025 = vmatprep.subr.mxu0 %v2361_v5 }
 0x12e   :  { %2068 = vmatprep.subr.mxu1 %v2395_v39  ;;  %2026 = vmatpush3.msra.mxu0 %v2361_v5 }
 0x12f   :  { %2069 = vmatpush3.msra.mxu1 %v2395_v39  ;;  %2027 = vmatprep.subr.mxu0 %v2377_v16 }
 0x130   :  { %2071 = vmatmul.mubr.f32.vlgmr.msra.gmra.mxu1 %v889_v58  ;;  %2108 = vmatprep.subr.mxu1 %v2220_v4 }
 0x131   :  { %2028 = vmatpush3.msra.mxu0 %v2377_v16  ;;  %2109 = vmatpush3.msra.mxu1 %v2220_v4  ;;  %v50_v4 = vpop.permute.xlu1 %49 }
 0x132   :  { %2140 = vmatprep.mubr.f32.mxu1 %v2614_v3  ;;  %2029 = vmatprep.subr.mxu0 %v2393_v38 }
 0x133   :  { %2110 = vmatprep.subr.mxu1 %v2222_v6  ;;  %2030 = vmatpush3.msra.mxu0 %v2393_v38 }
 0x134   :  { %2111 = vmatpush3.msra.mxu1 %v2222_v6  ;;  %2031 = vmatprep.subr.mxu0 %v2409_v47  ;;  %v1504_v6 = vld [vmem:[%s2875_s1 + $0x1] ss:$0 sm:$0xff] }
 0x135   :  { %2112 = vmatprep.subr.mxu1 %v2227_v11  ;;  %2032 = vmatpush3.msra.mxu0 %v2409_v47  ;;  %v54_v10 = vpop.permute.xlu1 %53 }
 0x136   :  { %2113 = vmatpush3.msra.mxu1 %v2227_v11  ;;  %2033 = vmatprep.subr.mxu0 %v2423_v62  ;;  %v60_v11 = vsub.f32 %v50_v4, %v1504_v6 }
 0x137   :  { %2114 = vmatprep.subr.mxu1 %v2229_v12  ;;  %2034 = vmatpush3.msra.mxu0 %v2423_v62 }
 0x138   :  { %2115 = vmatpush3.msra.mxu1 %v2229_v12  ;;  %2036 = vmatmul.mubr.f32.vlgmr.msra.gmra.mxu0 %v2700_v44  ;;  %v61_v12 = vsub.f32 %v54_v10, %v1504_v6 }
 0x139   :  { %2073 = vmatprep.subr.mxu0 %v2246_v21  ;;  %2116 = vmatprep.subr.mxu1 %v2232_v13 }
 0x13a   :  { %2074 = vmatpush3.msra.mxu0 %v2246_v21  ;;  %2105 = vmatprep.mubr.f32.mxu0 %v2614_v3 }
 0x13b   :  { %2117 = vmatpush3.msra.mxu1 %v2232_v13  ;;  %2075 = vmatprep.subr.mxu0 %v2259_v25  ;;  %v1506_v13 = vld [vmem:[%s2875_s1 + $0x3] ss:$0 sm:$0xff] }
 0x13c   :  { %2118 = vmatprep.subr.mxu1 %v2238_v18  ;;  %2076 = vmatpush3.msra.mxu0 %v2259_v25  ;;  %v74_v17 = vmul.f32 %v1506_v13, %v60_v11 }
 0x13d   :  { %2119 = vmatpush3.msra.mxu1 %v2238_v18  ;;  %2077 = vmatprep.subr.mxu0 %v2271_v29  ;;  %v75_v18 = vmul.f32 %v1506_v13, %v61_v12 }
 0x13e   :  { %2120 = vmatprep.subr.mxu1 %v2240_v19  ;;  %2078 = vmatpush3.msra.mxu0 %v2271_v29  ;;  %v92_v23 = vmul.f32 -2.0, %v74_v17 }
 0x13f   :  { %2121 = vmatpush3.msra.mxu1 %v2240_v19  ;;  %2079 = vmatprep.subr.mxu0 %v2274_v30  ;;  %v78_v19 = vmul.f32 %v74_v17, %v60_v11  ;;  %v93_v24 = vmul.f32 -2.0, %v75_v18 }
 0x140   :  { %2122 = vmatprep.subr.mxu1 %v2242_v20  ;;  %2080 = vmatpush3.msra.mxu0 %v2274_v30 }
 0x141   :  { %2123 = vmatpush3.msra.mxu1 %v2242_v20  ;;  %2081 = vmatprep.subr.mxu0 %v2277_v31  ;;  %v79_v20 = vmul.f32 %v75_v18, %v61_v12  ;;  %v84_v21 = vmul.f32 1.442695, %v78_v19 }
 0x142   :  { %2124 = vmatprep.subr.mxu1 %v2308_v46  ;;  %2082 = vmatpush3.msra.mxu0 %v2277_v31 }
 0x143   :  { %2125 = vmatpush3.msra.mxu1 %v2308_v46  ;;  %2083 = vmatprep.subr.mxu0 %v2283_v33  ;;  %v86_v22 = vmul.f32 1.442695, %v79_v20  ;;  %2155 = vpow2.f32 %v84_v21 }
 0x144   :  { %2126 = vmatprep.subr.mxu1 %v2317_v49  ;;  %2084 = vmatpush3.msra.mxu0 %v2283_v33 }
 0x145   :  { %2127 = vmatpush3.msra.mxu1 %v2317_v49  ;;  %2085 = vmatprep.subr.mxu0 %v2299_v41  ;;  %2157 = vpow2.f32 %v86_v22 }
 0x146   :  { %2128 = vmatprep.subr.mxu1 %v2326_v53  ;;  %2086 = vmatpush3.msra.mxu0 %v2299_v41 }
 0x147   :  { %2129 = vmatpush3.msra.mxu1 %v2326_v53  ;;  %2087 = vmatprep.subr.mxu0 %v2314_v48 }
 0x148   :  { %2130 = vmatprep.subr.mxu1 %v2328_v54  ;;  %2088 = vmatpush3.msra.mxu0 %v2314_v48 }
 0x149   :  { %2131 = vmatpush3.msra.mxu1 %v2328_v54  ;;  %2089 = vmatprep.subr.mxu0 %v2341_v59 }
 0x14a   :  { %2132 = vmatprep.subr.mxu1 %v2347_v61  ;;  %2090 = vmatpush3.msra.mxu0 %v2341_v59 }
 0x14b   :  { %2133 = vmatpush3.msra.mxu1 %v2347_v61  ;;  %2091 = vmatprep.subr.mxu0 %v2357_v2 }
 0x14c   :  { %2134 = vmatprep.subr.mxu1 %v2363_v7  ;;  %2092 = vmatpush3.msra.mxu0 %v2357_v2 }
 0x14d   :  { %2135 = vmatpush3.msra.mxu1 %v2363_v7  ;;  %2093 = vmatprep.subr.mxu0 %v2373_v15 }
 0x14e   :  { %2136 = vmatprep.subr.mxu1 %v2379_v28  ;;  %2094 = vmatpush3.msra.mxu0 %v2373_v15 }
 0x14f   :  { %2137 = vmatpush3.msra.mxu1 %v2379_v28  ;;  %2095 = vmatprep.subr.mxu0 %v2389_v37 }
 0x150   :  { %2138 = vmatprep.subr.mxu1 %v2395_v39  ;;  %2096 = vmatpush3.msra.mxu0 %v2389_v37  ;;  %v2156_v25 = vpop.eup %2155 }
 0x151   :  { %2139 = vmatpush3.msra.mxu1 %v2395_v39  ;;  %2097 = vmatprep.subr.mxu0 %v2938_v9  ;;  %v94_v27 = vmul.f32 %v2156_v25, %v92_v23 }
 0x152   :  { %2141 = vmatmul.mubr.f32.vlgmr.msra.gmra.mxu1 %v2688_v42  ;;  %2098 = vmatpush3.msra.mxu0 %v2938_v9  ;;  %v2158_v26 = vpop.eup %2157 }
 0x153   :  { %2099 = vmatprep.subr.mxu0 %v2940_v35  ;;  %v95_v29 = vmul.f32 %v2158_v26, %v93_v24 }
 0x154   :  { %2100 = vmatpush3.msra.mxu0 %v2940_v35 }
 0x155   :  { %2101 = vmatprep.subr.mxu0 %v2942_v50 }
 0x156   :  { %2102 = vmatpush3.msra.mxu0 %v2942_v50 }
 0x157   :  { %2103 = vmatprep.subr.mxu0 %v2944_v8 }
 0x158   :  { %2104 = vmatpush3.msra.mxu0 %v2944_v8 }
 0x159   :  { %2106 = vmatmul.mubr.f32.vlgmr.msra.gmra.mxu0 %v2688_v42 }
 0x169   :  { %v1792_v31 = vpop.f32.mrf.mxu1 }
 0x16b   :  { %v360_v41 = vpop.f32.mrf.mxu1 }
 0x171   :  { %v1757_v30 = vpop.f32.mrf.mxu0 }
 0x172   :  { %v367_v46 = vadd.f32 %v1792_v31, %v1757_v30 }
 0x173   :  { %v199_v33 = vpop.f32.mrf.mxu0 }
 0x174   :  { %v361_v52 = vadd.f32 %v360_v41, %v199_v33 }
 0x18a   :  { %v1862_v48 = vpop.f32.mrf.mxu1 }
 0x18c   :  { %v566_v56 = vpop.f32.mrf.mxu1 }
 0x192   :  { %v1827_v34 = vpop.f32.mrf.mxu0 }
 0x193   :  { %v478_v53 = vadd.f32 %v1827_v34, %v367_v46 }
 0x194   :  { %v470_v49 = vpop.f32.mrf.mxu0 }
 0x195   :  { %v471_v54 = vadd.f32 %v470_v49, %v361_v52  ;;  %v575_v59 = vadd.f32 %v1862_v48, %v478_v53 }
 0x197   :  { %v567_v5 = vadd.f32 %v566_v56, %v471_v54 }
 0x1ac   :  { %v1932_v60 = vpop.f32.mrf.mxu1 }
 0x1ae   :  { %v786_v28 = vpop.f32.mrf.mxu1 }
 0x1b4   :  { %v1897_v61 = vpop.f32.mrf.mxu0 }
 0x1b5   :  { %v700_v2 = vadd.f32 %v1897_v61, %v575_v59 }
 0x1b6   :  { %v693_v7 = vpop.f32.mrf.mxu0 }
 0x1b7   :  { %v793_v15 = vadd.f32 %v1932_v60, %v700_v2  ;;  %v694_v16 = vadd.f32 %v693_v7, %v567_v5 }
 0x1b9   :  { %v787_v37 = vadd.f32 %v786_v28, %v694_v16  ;;  %v1481_v38 = vmul.f32 %v2158_v26, %v793_v15 }
 0x1bb   :  { %1484 = vadd.xlane.f32.xlu1 %v1481_v38  ;;  %v1480_v39 = vmul.f32 %v2156_v25, %v787_v37 }
 0x1bd   :  { %1482 = vadd.xlane.f32.xlu0 %v1480_v39 }
 0x1ce   :  { %v2002_v62 = vpop.f32.mrf.mxu1 }
 0x1d0   :  { %v1044_v9 = vpop.f32.mrf.mxu1 }
 0x1d6   :  { %v1967_v47 = vpop.f32.mrf.mxu0 }
 0x1d7   :  { %v1051_v8 = vadd.f32 %v2002_v62, %v1967_v47 }
 0x1d8   :  { %v883_v3 = vpop.f32.mrf.mxu0 }
 0x1d9   :  { %v1045_v57 = vadd.f32 %v1044_v9, %v883_v3 }
 0x1f0   :  { %v2072_v35 = vpop.f32.mrf.mxu1 }
 0x1f2   :  { %v1250_v14 = vpop.f32.mrf.mxu1 }
 0x1f8   :  { %v2037_v36 = vpop.f32.mrf.mxu0 }
 0x1f9   :  { %v1162_v1 = vadd.f32 %v2037_v36, %v1051_v8 }
 0x1fa   :  { %v1154_v50 = vpop.f32.mrf.mxu0 }
 0x1fb   :  { %v1155_v63 = vadd.f32 %v1154_v50, %v1045_v57  ;;  %v1259_v0 = vadd.f32 %v2072_v35, %v1162_v1 }
 0x1fd   :  { %v1251_v32 = vadd.f32 %v1250_v14, %v1155_v63 }
 0x212   :  { %v2142_v55 = vpop.f32.mrf.mxu1 }
 0x214   :  { %v1470_v58 = vpop.f32.mrf.mxu1 }
 0x219   :  { %v2107_v42 = vpop.f32.mrf.mxu0 }
 0x21a   :  { %v1384_v51 = vadd.f32 %v2107_v42, %v1259_v0 }
 0x21b   :  { %v1377_v44 = vpop.f32.mrf.mxu0 }
 0x21c   :  { %v1378_v40 = vadd.f32 %v1377_v44, %v1251_v32  ;;  %v1477_v43 = vadd.f32 %v2142_v55, %v1384_v51 }
 0x21e   :  { %v1471_v45 = vadd.f32 %v1470_v58, %v1378_v40  ;;  %v1487_v6 = vmul.f32 %v1477_v43, %v95_v29 }
 0x220   :  { %v1486_v4 = vmul.f32 %v1471_v45, %v94_v27 }
 0x222   :  { %1488 = vadd.xlane.f32.xlu0 %v1486_v4 }
 0x226   :  { %1490 = vadd.xlane.f32.xlu0 %v1487_v6 }
 0x244   :  { %v1485_v13 = vpop.xlane.xlu1 %1484 }
 0x246   :  { %v1483_v10 = vpop.xlane.xlu0 %1482 }
 0x2ab   :  { %v1489_v11 = vpop.xlane.xlu0 %1488 }
 0x2ac   :  { %v1493_v12 = vsel %vm1492_vm0, %v1483_v10, %v1489_v11 }
 0x2ad   :  { %1496 = vst.msk [vmem:[%s2877_s3] sm:$0xff] %vm1495_vm1, %v1493_v12 }
 0x2af   :  { %v1491_v17 = vpop.xlane.xlu0 %1490 }
 0x2b0   :  { %v1494_v18 = vsel %vm1492_vm0, %v1485_v13, %v1491_v17 }
 0x2b1   :  { %1497 = vst.msk [vmem:[%s2877_s3 + $0x8] sm:$0xff] %vm1495_vm1, %v1494_v18 }
 0x2b2   :  { %1502 = vsyncpa [#allocation3], 1 }

</bundles_post_ra>
